<compile_context>
chip_gen: v7x
topology: tpu7x:2x2x1
jax: 0.10.0
libtpu: 0.0.40
codegen_flags: <defaults>
</compile_context>

<pallas_src>
import math

import jax
import jax.numpy as jnp
from jax.experimental import pallas as pl
from jax.experimental.pallas import tpu as pltpu


# ---------------------------------------------------------------------------
# In-kernel helpers
# ---------------------------------------------------------------------------
def _layernorm(x, g, b, eps=1e-5):
    mu = jnp.mean(x, axis=-1, keepdims=True)
    var = jnp.mean((x - mu) ** 2, axis=-1, keepdims=True)
    return (x - mu) * jax.lax.rsqrt(var + eps) * g + b


def _gelu_exact(x):
    # matches torch.nn.GELU(approximate='none')
    return 0.5 * x * (1.0 + jax.lax.erf(x * (1.0 / math.sqrt(2.0))))


def make_block_kernel(heads: int, dim_head: int, compute_dtype, approx_recip: bool):
    inner = heads * dim_head
    # bf16 exp on v6e/v7x EUP; keep f32 exp on the f32 parity path.
    exp_dtype = (jnp.bfloat16
                 if jnp.dtype(compute_dtype) == jnp.dtype(jnp.bfloat16)
                 else jnp.float32)

    def kernel(x_ref, ln1g_ref, ln1b_ref, wqkv_ref, wout_ref, bout_ref,
               ln2g_ref, ln2b_ref, w1_ref, b1_ref, w2_ref, b2_ref, o_ref):
        x = x_ref[0]                                              # (N, D) f32

        # ------------- attention branch: PreNorm(SelfAttention) -------------
        xn = _layernorm(x, ln1g_ref[...], ln1b_ref[...])
        # One lane-dense QKV projection: (N, D) @ (D, 3*inner); scale already
        # folded into the Q columns of Wqkv in the wrapper.
        qkv = jnp.dot(xn.astype(compute_dtype), wqkv_ref[...],
                      preferred_element_type=jnp.float32)         # (N, 3*inner)
        qkv_c = qkv.astype(compute_dtype)

        head_outs = []
        for h in range(heads):                                    # static unroll
            off = h * dim_head
            q_h = qkv_c[:, off:off + dim_head]                    # (N, dh)
            k_h = qkv_c[:, inner + off:inner + off + dim_head]    # (N, dh)
            v_h = qkv_c[:, 2 * inner + off:2 * inner + off + dim_head]

            # scores: q_h @ k_h^T, f32 accumulation on the MXU
            s = jax.lax.dot_general(q_h, k_h, (((1,), (1,)), ((), ())),
                                    preferred_element_type=jnp.float32)  # (N, N)
            s = s - jnp.max(s, axis=-1, keepdims=True)            # f32 max
            p = jnp.exp(s.astype(exp_dtype))                      # EUP (bf16 path)
            l = jnp.sum(p, axis=-1, keepdims=True, dtype=jnp.float32)

            attn_h = jnp.dot(p.astype(compute_dtype), v_h,
                             preferred_element_type=jnp.float32)  # (N, dh) f32
            # normalize after PV: N*dh multiplies instead of N*N
            attn_h = attn_h * pl.reciprocal(l, approx=approx_recip)
            head_outs.append(attn_h.astype(compute_dtype))

        # concat-over-heads then a single inner-contraction output projection
        attn_cat = jnp.concatenate(head_outs, axis=-1)            # (N, inner)
        attn_out = jnp.dot(attn_cat, wout_ref[...],
                           preferred_element_type=jnp.float32) + bout_ref[...]
        x1 = attn_out + x                                         # residual 1

        # ------------- feed-forward branch: PreNorm(FeedForward) ------------
        xn2 = _layernorm(x1, ln2g_ref[...], ln2b_ref[...])
        h1 = jnp.dot(xn2.astype(compute_dtype), w1_ref[...],
                     preferred_element_type=jnp.float32) + b1_ref[...]
        h1 = _gelu_exact(h1)                                      # exact erf GELU
        ff = jnp.dot(h1.astype(compute_dtype), w2_ref[...],
                     preferred_element_type=jnp.float32) + b2_ref[...]
        o_ref[0] = (ff + x1).astype(o_ref.dtype)                  # residual 2

    return kernel


# ---------------------------------------------------------------------------
# Wrapper
# ---------------------------------------------------------------------------
def self_attention_block(x, params, *, heads, dim_head, scale=None,
                         compute_dtype=jnp.bfloat16):
    B, N, D = x.shape
    inner = heads * dim_head
    scale = dim_head ** (-0.5) if scale is None else scale
    approx_recip = jnp.dtype(compute_dtype) != jnp.dtype(jnp.float32)

    # --- weight prep: fold softmax scale into Q columns, cast to MXU dtype --
    wqkv = params["wqkv"]                                         # (D, 3*inner)
    wqkv_p = jnp.concatenate(
        [wqkv[:, :inner] * scale, wqkv[:, inner:]], axis=-1).astype(compute_dtype)
    wout = params["wout"].astype(compute_dtype)                   # (inner, D)
    w1 = params["w1"].astype(compute_dtype)
    w2 = params["w2"].astype(compute_dtype)

    kernel = make_block_kernel(heads, dim_head, compute_dtype, approx_recip)

    def full_spec(shape):
        n = len(shape)
        return pl.BlockSpec(shape, lambda b, n=n: (0,) * n)

    in_specs = [
        pl.BlockSpec((1, N, D), lambda b: (b, 0, 0)),             # x
        full_spec((1, D)), full_spec((1, D)),                     # ln1 gamma/beta
        full_spec((D, 3 * inner)),                                # Wqkv (scaled Q)
        full_spec((inner, D)),                                    # Wout
        full_spec((1, D)),                                        # bout
        full_spec((1, D)), full_spec((1, D)),                     # ln2 gamma/beta
        full_spec((D, D)), full_spec((1, D)),                     # FF w1, b1
        full_spec((D, D)), full_spec((1, D)),                     # FF w2, b2
    ]

    # Advisory cost estimate for XLA's scheduler around the custom call.
    flops = 2 * B * N * (D * 3 * inner + 2 * heads * N * dim_head
                         + inner * D + 2 * D * D)
    transcendentals = B * (heads * N * N + N * D)
    bytes_accessed = (2 * B * N * D * x.dtype.itemsize
                      + (4 * D * inner + 2 * D * D)
                      * jnp.dtype(compute_dtype).itemsize
                      + 7 * D * 4)
    cost = pl.CostEstimate(flops=int(flops),
                           transcendentals=int(transcendentals),
                           bytes_accessed=int(bytes_accessed))

    return pl.pallas_call(
        kernel,
        out_shape=jax.ShapeDtypeStruct((B, N, D), x.dtype),
        grid_spec=pltpu.PrefetchScalarGridSpec(
            num_scalar_prefetch=0,
            grid=(B,),                       # "parallel": B>=2 keeps both v7x TCs busy
            in_specs=in_specs,
            out_specs=pl.BlockSpec((1, N, D), lambda b: (b, 0, 0)),
        ),
        compiler_params=pltpu.CompilerParams(
            dimension_semantics=("parallel",),
            # > default scoped limit (16 MiB v5e / 32 MiB v6e,v7x), below v7x's
            # 64 MiB physical VMEM with double-buffer headroom.
            vmem_limit_bytes=48 * 1024 * 1024,
        ),
        cost_estimate=cost,
    )(x, params["ln1_g"], params["ln1_b"], wqkv_p, wout, params["bout"],
      params["ln2_g"], params["ln2_b"], w1, params["b1"], w2, params["b2"])


# ---------------------------------------------------------------------------
# Deterministic parameter init (mirrors the torch module's reset_parameters)
# ---------------------------------------------------------------------------
def init_params(key, dim, heads, dim_head):
    inner = heads * dim_head
    ks = jax.random.split(key, 6)

    def xavier(k, fan_in, fan_out, gain=1.0):
        bound = gain * math.sqrt(6.0 / (fan_in + fan_out))
        return jax.random.uniform(k, (fan_in, fan_out), jnp.float32, -bound, bound)

    def torch_linear(kw, kb, fan_in, fan_out):
        bound = 1.0 / math.sqrt(fan_in)
        w = jax.random.uniform(kw, (fan_in, fan_out), jnp.float32, -bound, bound)
        b = jax.random.uniform(kb, (1, fan_out), jnp.float32, -bound, bound)
        return w, b

    w1, b1 = torch_linear(ks[2], ks[3], dim, dim)
    w2, b2 = torch_linear(ks[4], ks[5], dim, dim)
    return dict(
        ln1_g=jnp.ones((1, dim), jnp.float32), ln1_b=jnp.zeros((1, dim), jnp.float32),
        wqkv=xavier(ks[0], dim, 3 * inner, gain=1.0 / math.sqrt(2.0)),
        wout=xavier(ks[1], inner, dim),
        bout=jnp.zeros((1, dim), jnp.float32),
        ln2_g=jnp.ones((1, dim), jnp.float32), ln2_b=jnp.zeros((1, dim), jnp.float32),
        w1=w1, b1=b1, w2=w2, b2=b2,
    )


# ---------------------------------------------------------------------------
# Pure-JAX reference (correctness check)
# ---------------------------------------------------------------------------
def reference(x, p, heads, dim_head, scale):
    def ln(v, g, b):
        mu = jnp.mean(v, -1, keepdims=True)
        var = jnp.mean((v - mu) ** 2, -1, keepdims=True)
        return (v - mu) / jnp.sqrt(var + 1e-5) * g + b

    B, N, D = x.shape
    inner = heads * dim_head
    xn = ln(x, p["ln1_g"], p["ln1_b"])
    qkv = xn @ p["wqkv"]
    q, k, v = jnp.split(qkv, 3, axis=-1)
    split_heads = lambda t: t.reshape(B, N, heads, dim_head).transpose(0, 2, 1, 3)
    q, k, v = map(split_heads, (q, k, v))
    s = jnp.einsum("bhnd,bhmd->bhnm", q, k) * scale
    attn = jnp.einsum("bhnm,bhmd->bhnd", jax.nn.softmax(s, axis=-1), v)
    attn = attn.transpose(0, 2, 1, 3).reshape(B, N, inner)
    x1 = attn @ p["wout"] + p["bout"] + x
    xn2 = ln(x1, p["ln2_g"], p["ln2_b"])
    h = jax.nn.gelu(xn2 @ p["w1"] + p["b1"], approximate=False)
    return h @ p["w2"] + p["b2"] + x1


# ---------------------------------------------------------------------------
if __name__ == "__main__":
    # Toy shapes per instructions.  NOTE: with D=32 (<128 lanes) the output
    # stores are masked; at realistic model dims (D, inner multiples of 128,
    # dim_head >= 64) the same kernel presents lane-dense tiles to the MXU/VPU.
    B, N, dim = 2, 8, 32          # batch, sequence, model dim
    heads, dim_head = 4, 16       # inner_dim = 64
    scale = dim_head ** (-0.5)

    key = jax.random.PRNGKey(0)
    kx, kp = jax.random.split(key)
    x = jax.random.normal(kx, (B, N, dim), jnp.float32)
    params = init_params(kp, dim, heads, dim_head)

    ref = reference(x, params, heads, dim_head, scale)

    # f32 compute path: tight parity with the reference.
    out_f32 = jax.block_until_ready(
        self_attention_block(x, params, heads=heads, dim_head=dim_head,
                             compute_dtype=jnp.float32))
    assert out_f32.shape == (B, N, dim)
    err32 = jnp.max(jnp.abs(out_f32 - ref))
    assert jnp.allclose(out_f32, ref, atol=1e-3, rtol=1e-3), (
        f"f32 path max abs err {err32}")

    # bf16 MXU path (default): f32 accumulation, looser tolerance.
    out_bf16 = jax.block_until_ready(
        self_attention_block(x, params, heads=heads, dim_head=dim_head))
    assert out_bf16.shape == (B, N, dim)
    errbf = jnp.max(jnp.abs(out_bf16 - ref))
    assert jnp.allclose(out_bf16, ref, atol=5e-2, rtol=5e-2), (
        f"bf16 path max abs err {errbf}")

    print("KERNEL_OK")
</pallas_src>

<mosaic_0001>
module attributes {stable_mosaic.version = 11 : i64} {
  func.func @kernel(%arg0: i32, %arg1: memref<1x8x32xf32, #tpu.memory_space<vmem>>, %arg2: memref<1x32xf32, #tpu.memory_space<vmem>>, %arg3: memref<1x32xf32, #tpu.memory_space<vmem>>, %arg4: memref<32x192xf32, #tpu.memory_space<vmem>>, %arg5: memref<64x32xf32, #tpu.memory_space<vmem>>, %arg6: memref<1x32xf32, #tpu.memory_space<vmem>>, %arg7: memref<1x32xf32, #tpu.memory_space<vmem>>, %arg8: memref<1x32xf32, #tpu.memory_space<vmem>>, %arg9: memref<32x32xf32, #tpu.memory_space<vmem>>, %arg10: memref<1x32xf32, #tpu.memory_space<vmem>>, %arg11: memref<32x32xf32, #tpu.memory_space<vmem>>, %arg12: memref<1x32xf32, #tpu.memory_space<vmem>>, %arg13: memref<1x8x32xf32, #tpu.memory_space<vmem>>) attributes {dimension_semantics = [#tpu.dimension_semantics<parallel>], iteration_bounds = array<i64: 2>, scalar_prefetch = 0 : i64, scratch_operands = 0 : i64, tpu.core_type = #tpu.core_type<tc>, window_params = [{transform_indices = @transform_0, window_bounds = array<i64: 1, 8, 32>}, {pipeline_mode = #tpu.pipeline_mode<synchronous>, transform_indices = @transform_1, window_bounds = array<i64: 1, 32>}, {pipeline_mode = #tpu.pipeline_mode<synchronous>, transform_indices = @transform_2, window_bounds = array<i64: 1, 32>}, {pipeline_mode = #tpu.pipeline_mode<synchronous>, transform_indices = @transform_3, window_bounds = array<i64: 32, 192>}, {pipeline_mode = #tpu.pipeline_mode<synchronous>, transform_indices = @transform_4, window_bounds = array<i64: 64, 32>}, {pipeline_mode = #tpu.pipeline_mode<synchronous>, transform_indices = @transform_5, window_bounds = array<i64: 1, 32>}, {pipeline_mode = #tpu.pipeline_mode<synchronous>, transform_indices = @transform_6, window_bounds = array<i64: 1, 32>}, {pipeline_mode = #tpu.pipeline_mode<synchronous>, transform_indices = @transform_7, window_bounds = array<i64: 1, 32>}, {pipeline_mode = #tpu.pipeline_mode<synchronous>, transform_indices = @transform_8, window_bounds = array<i64: 32, 32>}, {pipeline_mode = #tpu.pipeline_mode<synchronous>, transform_indices = @transform_9, window_bounds = array<i64: 1, 32>}, {pipeline_mode = #tpu.pipeline_mode<synchronous>, transform_indices = @transform_10, window_bounds = array<i64: 32, 32>}, {pipeline_mode = #tpu.pipeline_mode<synchronous>, transform_indices = @transform_11, window_bounds = array<i64: 1, 32>}, {transform_indices = @transform_12, window_bounds = array<i64: 1, 8, 32>}]} {
    %c0 = arith.constant 0 : index
    %c0_0 = arith.constant 0 : index
    %c0_1 = arith.constant 0 : index
    %0 = vector.load %arg1[%c0, %c0_0, %c0_1] : memref<1x8x32xf32, #tpu.memory_space<vmem>>, vector<1x8x32xf32>
    %1 = vector.shape_cast %0 : vector<1x8x32xf32> to vector<8x32xf32>
    %c0_2 = arith.constant 0 : index
    %c0_3 = arith.constant 0 : index
    %2 = vector.load %arg2[%c0_2, %c0_3] : memref<1x32xf32, #tpu.memory_space<vmem>>, vector<1x32xf32>
    %c0_4 = arith.constant 0 : index
    %c0_5 = arith.constant 0 : index
    %3 = vector.load %arg3[%c0_4, %c0_5] : memref<1x32xf32, #tpu.memory_space<vmem>>, vector<1x32xf32>
    %cst = arith.constant dense<0.000000e+00> : vector<8xf32>
    %4 = vector.multi_reduction <add>, %1, %cst [1] : vector<8x32xf32> to vector<8xf32>
    %5 = vector.shape_cast %4 : vector<8xf32> to vector<8x1xf32>
    %cst_6 = arith.constant 3.200000e+01 : f32
    %6 = vector.broadcast %cst_6 : f32 to vector<8x1xf32>
    %7 = arith.divf %5, %6 : vector<8x1xf32>
    %8 = vector.broadcast %7 : vector<8x1xf32> to vector<8x32xf32>
    %9 = arith.subf %1, %8 : vector<8x32xf32>
    %10 = arith.mulf %9, %9 : vector<8x32xf32>
    %cst_7 = arith.constant dense<0.000000e+00> : vector<8xf32>
    %11 = vector.multi_reduction <add>, %10, %cst_7 [1] : vector<8x32xf32> to vector<8xf32>
    %12 = vector.shape_cast %11 : vector<8xf32> to vector<8x1xf32>
    %cst_8 = arith.constant 3.200000e+01 : f32
    %13 = vector.broadcast %cst_8 : f32 to vector<8x1xf32>
    %14 = arith.divf %12, %13 : vector<8x1xf32>
    %15 = vector.broadcast %7 : vector<8x1xf32> to vector<8x32xf32>
    %16 = arith.subf %1, %15 : vector<8x32xf32>
    %cst_9 = arith.constant 9.99999974E-6 : f32
    %17 = vector.broadcast %cst_9 : f32 to vector<8x1xf32>
    %18 = arith.addf %14, %17 : vector<8x1xf32>
    %19 = math.rsqrt %18 : vector<8x1xf32>
    %20 = vector.broadcast %19 : vector<8x1xf32> to vector<8x32xf32>
    %21 = arith.mulf %16, %20 : vector<8x32xf32>
    %22 = vector.broadcast %2 : vector<1x32xf32> to vector<8x32xf32>
    %23 = arith.mulf %21, %22 : vector<8x32xf32>
    %24 = vector.broadcast %3 : vector<1x32xf32> to vector<8x32xf32>
    %25 = arith.addf %23, %24 : vector<8x32xf32>
    %c0_10 = arith.constant 0 : index
    %c0_11 = arith.constant 0 : index
    %26 = vector.load %arg4[%c0_10, %c0_11] : memref<32x192xf32, #tpu.memory_space<vmem>>, vector<32x192xf32>
    %cst_12 = arith.constant dense<0.000000e+00> : vector<8x192xf32>
    %27 = tpu.matmul %25, %26, %cst_12 {dimension_numbers = #tpu.dot_dimension_numbers<[1], [0], [0], [1], [0, 0, 1, 1], [], []>} : vector<8x32xf32>, vector<32x192xf32>, vector<8x192xf32> -> vector<8x192xf32>
    %28 = vector.extract_strided_slice %27 {offsets = [0, 0], sizes = [8, 16], strides = [1, 1]} : vector<8x192xf32> to vector<8x16xf32>
    %29 = vector.extract_strided_slice %27 {offsets = [0, 64], sizes = [8, 16], strides = [1, 1]} : vector<8x192xf32> to vector<8x16xf32>
    %30 = vector.extract_strided_slice %27 {offsets = [0, 128], sizes = [8, 16], strides = [1, 1]} : vector<8x192xf32> to vector<8x16xf32>
    %cst_13 = arith.constant dense<0.000000e+00> : vector<8x8xf32>
    %31 = tpu.matmul %28, %29, %cst_13 {dimension_numbers = #tpu.dot_dimension_numbers<[1], [1], [0], [0], [0, 0, 1, 0], [], []>} : vector<8x16xf32>, vector<8x16xf32>, vector<8x8xf32> -> vector<8x8xf32>
    %cst_14 = arith.constant dense<0xFF800000> : vector<8xf32>
    %32 = vector.multi_reduction <maximumf>, %31, %cst_14 [1] : vector<8x8xf32> to vector<8xf32>
    %33 = vector.shape_cast %32 : vector<8xf32> to vector<8x1xf32>
    %34 = vector.broadcast %33 : vector<8x1xf32> to vector<8x8xf32>
    %35 = arith.subf %31, %34 : vector<8x8xf32>
    %36 = math.exp %35 : vector<8x8xf32>
    %cst_15 = arith.constant dense<0.000000e+00> : vector<8xf32>
    %37 = vector.multi_reduction <add>, %36, %cst_15 [1] : vector<8x8xf32> to vector<8xf32>
    %38 = vector.shape_cast %37 : vector<8xf32> to vector<8x1xf32>
    %cst_16 = arith.constant dense<0.000000e+00> : vector<8x16xf32>
    %39 = tpu.matmul %36, %30, %cst_16 {dimension_numbers = #tpu.dot_dimension_numbers<[1], [0], [0], [1], [0, 0, 1, 1], [], []>} : vector<8x8xf32>, vector<8x16xf32>, vector<8x16xf32> -> vector<8x16xf32>
    %40 = tpu.reciprocal %38 : vector<8x1xf32> -> vector<8x1xf32>
    %41 = vector.broadcast %40 : vector<8x1xf32> to vector<8x16xf32>
    %42 = arith.mulf %39, %41 : vector<8x16xf32>
    %43 = vector.extract_strided_slice %27 {offsets = [0, 16], sizes = [8, 16], strides = [1, 1]} : vector<8x192xf32> to vector<8x16xf32>
    %44 = vector.extract_strided_slice %27 {offsets = [0, 80], sizes = [8, 16], strides = [1, 1]} : vector<8x192xf32> to vector<8x16xf32>
    %45 = vector.extract_strided_slice %27 {offsets = [0, 144], sizes = [8, 16], strides = [1, 1]} : vector<8x192xf32> to vector<8x16xf32>
    %cst_17 = arith.constant dense<0.000000e+00> : vector<8x8xf32>
    %46 = tpu.matmul %43, %44, %cst_17 {dimension_numbers = #tpu.dot_dimension_numbers<[1], [1], [0], [0], [0, 0, 1, 0], [], []>} : vector<8x16xf32>, vector<8x16xf32>, vector<8x8xf32> -> vector<8x8xf32>
    %cst_18 = arith.constant dense<0xFF800000> : vector<8xf32>
    %47 = vector.multi_reduction <maximumf>, %46, %cst_18 [1] : vector<8x8xf32> to vector<8xf32>
    %48 = vector.shape_cast %47 : vector<8xf32> to vector<8x1xf32>
    %49 = vector.broadcast %48 : vector<8x1xf32> to vector<8x8xf32>
    %50 = arith.subf %46, %49 : vector<8x8xf32>
    %51 = math.exp %50 : vector<8x8xf32>
    %cst_19 = arith.constant dense<0.000000e+00> : vector<8xf32>
    %52 = vector.multi_reduction <add>, %51, %cst_19 [1] : vector<8x8xf32> to vector<8xf32>
    %53 = vector.shape_cast %52 : vector<8xf32> to vector<8x1xf32>
    %cst_20 = arith.constant dense<0.000000e+00> : vector<8x16xf32>
    %54 = tpu.matmul %51, %45, %cst_20 {dimension_numbers = #tpu.dot_dimension_numbers<[1], [0], [0], [1], [0, 0, 1, 1], [], []>} : vector<8x8xf32>, vector<8x16xf32>, vector<8x16xf32> -> vector<8x16xf32>
    %55 = tpu.reciprocal %53 : vector<8x1xf32> -> vector<8x1xf32>
    %56 = vector.broadcast %55 : vector<8x1xf32> to vector<8x16xf32>
    %57 = arith.mulf %54, %56 : vector<8x16xf32>
    %58 = vector.extract_strided_slice %27 {offsets = [0, 32], sizes = [8, 16], strides = [1, 1]} : vector<8x192xf32> to vector<8x16xf32>
    %59 = vector.extract_strided_slice %27 {offsets = [0, 96], sizes = [8, 16], strides = [1, 1]} : vector<8x192xf32> to vector<8x16xf32>
    %60 = vector.extract_strided_slice %27 {offsets = [0, 160], sizes = [8, 16], strides = [1, 1]} : vector<8x192xf32> to vector<8x16xf32>
    %cst_21 = arith.constant dense<0.000000e+00> : vector<8x8xf32>
    %61 = tpu.matmul %58, %59, %cst_21 {dimension_numbers = #tpu.dot_dimension_numbers<[1], [1], [0], [0], [0, 0, 1, 0], [], []>} : vector<8x16xf32>, vector<8x16xf32>, vector<8x8xf32> -> vector<8x8xf32>
    %cst_22 = arith.constant dense<0xFF800000> : vector<8xf32>
    %62 = vector.multi_reduction <maximumf>, %61, %cst_22 [1] : vector<8x8xf32> to vector<8xf32>
    %63 = vector.shape_cast %62 : vector<8xf32> to vector<8x1xf32>
    %64 = vector.broadcast %63 : vector<8x1xf32> to vector<8x8xf32>
    %65 = arith.subf %61, %64 : vector<8x8xf32>
    %66 = math.exp %65 : vector<8x8xf32>
    %cst_23 = arith.constant dense<0.000000e+00> : vector<8xf32>
    %67 = vector.multi_reduction <add>, %66, %cst_23 [1] : vector<8x8xf32> to vector<8xf32>
    %68 = vector.shape_cast %67 : vector<8xf32> to vector<8x1xf32>
    %cst_24 = arith.constant dense<0.000000e+00> : vector<8x16xf32>
    %69 = tpu.matmul %66, %60, %cst_24 {dimension_numbers = #tpu.dot_dimension_numbers<[1], [0], [0], [1], [0, 0, 1, 1], [], []>} : vector<8x8xf32>, vector<8x16xf32>, vector<8x16xf32> -> vector<8x16xf32>
    %70 = tpu.reciprocal %68 : vector<8x1xf32> -> vector<8x1xf32>
    %71 = vector.broadcast %70 : vector<8x1xf32> to vector<8x16xf32>
    %72 = arith.mulf %69, %71 : vector<8x16xf32>
    %73 = vector.extract_strided_slice %27 {offsets = [0, 48], sizes = [8, 16], strides = [1, 1]} : vector<8x192xf32> to vector<8x16xf32>
    %74 = vector.extract_strided_slice %27 {offsets = [0, 112], sizes = [8, 16], strides = [1, 1]} : vector<8x192xf32> to vector<8x16xf32>
    %75 = vector.extract_strided_slice %27 {offsets = [0, 176], sizes = [8, 16], strides = [1, 1]} : vector<8x192xf32> to vector<8x16xf32>
    %cst_25 = arith.constant dense<0.000000e+00> : vector<8x8xf32>
    %76 = tpu.matmul %73, %74, %cst_25 {dimension_numbers = #tpu.dot_dimension_numbers<[1], [1], [0], [0], [0, 0, 1, 0], [], []>} : vector<8x16xf32>, vector<8x16xf32>, vector<8x8xf32> -> vector<8x8xf32>
    %cst_26 = arith.constant dense<0xFF800000> : vector<8xf32>
    %77 = vector.multi_reduction <maximumf>, %76, %cst_26 [1] : vector<8x8xf32> to vector<8xf32>
    %78 = vector.shape_cast %77 : vector<8xf32> to vector<8x1xf32>
    %79 = vector.broadcast %78 : vector<8x1xf32> to vector<8x8xf32>
    %80 = arith.subf %76, %79 : vector<8x8xf32>
    %81 = math.exp %80 : vector<8x8xf32>
    %cst_27 = arith.constant dense<0.000000e+00> : vector<8xf32>
    %82 = vector.multi_reduction <add>, %81, %cst_27 [1] : vector<8x8xf32> to vector<8xf32>
    %83 = vector.shape_cast %82 : vector<8xf32> to vector<8x1xf32>
    %cst_28 = arith.constant dense<0.000000e+00> : vector<8x16xf32>
    %84 = tpu.matmul %81, %75, %cst_28 {dimension_numbers = #tpu.dot_dimension_numbers<[1], [0], [0], [1], [0, 0, 1, 1], [], []>} : vector<8x8xf32>, vector<8x16xf32>, vector<8x16xf32> -> vector<8x16xf32>
    %85 = tpu.reciprocal %83 : vector<8x1xf32> -> vector<8x1xf32>
    %86 = vector.broadcast %85 : vector<8x1xf32> to vector<8x16xf32>
    %87 = arith.mulf %84, %86 : vector<8x16xf32>
    %88 = tpu.concatenate %42, %57, %72, %87 in 1 : vector<8x16xf32>, vector<8x16xf32>, vector<8x16xf32>, vector<8x16xf32> -> vector<8x64xf32>
    %c0_29 = arith.constant 0 : index
    %c0_30 = arith.constant 0 : index
    %89 = vector.load %arg5[%c0_29, %c0_30] : memref<64x32xf32, #tpu.memory_space<vmem>>, vector<64x32xf32>
    %cst_31 = arith.constant dense<0.000000e+00> : vector<8x32xf32>
    %90 = tpu.matmul %88, %89, %cst_31 {dimension_numbers = #tpu.dot_dimension_numbers<[1], [0], [0], [1], [0, 0, 1, 1], [], []>} : vector<8x64xf32>, vector<64x32xf32>, vector<8x32xf32> -> vector<8x32xf32>
    %c0_32 = arith.constant 0 : index
    %c0_33 = arith.constant 0 : index
    %91 = vector.load %arg6[%c0_32, %c0_33] : memref<1x32xf32, #tpu.memory_space<vmem>>, vector<1x32xf32>
    %92 = vector.broadcast %91 : vector<1x32xf32> to vector<8x32xf32>
    %93 = arith.addf %90, %92 : vector<8x32xf32>
    %94 = arith.addf %93, %1 : vector<8x32xf32>
    %c0_34 = arith.constant 0 : index
    %c0_35 = arith.constant 0 : index
    %95 = vector.load %arg7[%c0_34, %c0_35] : memref<1x32xf32, #tpu.memory_space<vmem>>, vector<1x32xf32>
    %c0_36 = arith.constant 0 : index
    %c0_37 = arith.constant 0 : index
    %96 = vector.load %arg8[%c0_36, %c0_37] : memref<1x32xf32, #tpu.memory_space<vmem>>, vector<1x32xf32>
    %cst_38 = arith.constant dense<0.000000e+00> : vector<8xf32>
    %97 = vector.multi_reduction <add>, %94, %cst_38 [1] : vector<8x32xf32> to vector<8xf32>
    %98 = vector.shape_cast %97 : vector<8xf32> to vector<8x1xf32>
    %cst_39 = arith.constant 3.200000e+01 : f32
    %99 = vector.broadcast %cst_39 : f32 to vector<8x1xf32>
    %100 = arith.divf %98, %99 : vector<8x1xf32>
    %101 = vector.broadcast %100 : vector<8x1xf32> to vector<8x32xf32>
    %102 = arith.subf %94, %101 : vector<8x32xf32>
    %103 = arith.mulf %102, %102 : vector<8x32xf32>
    %cst_40 = arith.constant dense<0.000000e+00> : vector<8xf32>
    %104 = vector.multi_reduction <add>, %103, %cst_40 [1] : vector<8x32xf32> to vector<8xf32>
    %105 = vector.shape_cast %104 : vector<8xf32> to vector<8x1xf32>
    %cst_41 = arith.constant 3.200000e+01 : f32
    %106 = vector.broadcast %cst_41 : f32 to vector<8x1xf32>
    %107 = arith.divf %105, %106 : vector<8x1xf32>
    %108 = vector.broadcast %100 : vector<8x1xf32> to vector<8x32xf32>
    %109 = arith.subf %94, %108 : vector<8x32xf32>
    %cst_42 = arith.constant 9.99999974E-6 : f32
    %110 = vector.broadcast %cst_42 : f32 to vector<8x1xf32>
    %111 = arith.addf %107, %110 : vector<8x1xf32>
    %112 = math.rsqrt %111 : vector<8x1xf32>
    %113 = vector.broadcast %112 : vector<8x1xf32> to vector<8x32xf32>
    %114 = arith.mulf %109, %113 : vector<8x32xf32>
    %115 = vector.broadcast %95 : vector<1x32xf32> to vector<8x32xf32>
    %116 = arith.mulf %114, %115 : vector<8x32xf32>
    %117 = vector.broadcast %96 : vector<1x32xf32> to vector<8x32xf32>
    %118 = arith.addf %116, %117 : vector<8x32xf32>
    %c0_43 = arith.constant 0 : index
    %c0_44 = arith.constant 0 : index
    %119 = vector.load %arg9[%c0_43, %c0_44] : memref<32x32xf32, #tpu.memory_space<vmem>>, vector<32x32xf32>
    %cst_45 = arith.constant dense<0.000000e+00> : vector<8x32xf32>
    %120 = tpu.matmul %118, %119, %cst_45 {dimension_numbers = #tpu.dot_dimension_numbers<[1], [0], [0], [1], [0, 0, 1, 1], [], []>} : vector<8x32xf32>, vector<32x32xf32>, vector<8x32xf32> -> vector<8x32xf32>
    %c0_46 = arith.constant 0 : index
    %c0_47 = arith.constant 0 : index
    %121 = vector.load %arg10[%c0_46, %c0_47] : memref<1x32xf32, #tpu.memory_space<vmem>>, vector<1x32xf32>
    %122 = vector.broadcast %121 : vector<1x32xf32> to vector<8x32xf32>
    %123 = arith.addf %120, %122 : vector<8x32xf32>
    %cst_48 = arith.constant 5.000000e-01 : f32
    %124 = vector.broadcast %cst_48 : f32 to vector<8x32xf32>
    %125 = arith.mulf %124, %123 : vector<8x32xf32>
    %cst_49 = arith.constant 0.707106769 : f32
    %126 = vector.broadcast %cst_49 : f32 to vector<8x32xf32>
    %127 = arith.mulf %123, %126 : vector<8x32xf32>
    %128 = math.erf %127 : vector<8x32xf32>
    %cst_50 = arith.constant 1.000000e+00 : f32
    %129 = vector.broadcast %cst_50 : f32 to vector<8x32xf32>
    %130 = arith.addf %129, %128 : vector<8x32xf32>
    %131 = arith.mulf %125, %130 : vector<8x32xf32>
    %c0_51 = arith.constant 0 : index
    %c0_52 = arith.constant 0 : index
    %132 = vector.load %arg11[%c0_51, %c0_52] : memref<32x32xf32, #tpu.memory_space<vmem>>, vector<32x32xf32>
    %cst_53 = arith.constant dense<0.000000e+00> : vector<8x32xf32>
    %133 = tpu.matmul %131, %132, %cst_53 {dimension_numbers = #tpu.dot_dimension_numbers<[1], [0], [0], [1], [0, 0, 1, 1], [], []>} : vector<8x32xf32>, vector<32x32xf32>, vector<8x32xf32> -> vector<8x32xf32>
    %c0_54 = arith.constant 0 : index
    %c0_55 = arith.constant 0 : index
    %134 = vector.load %arg12[%c0_54, %c0_55] : memref<1x32xf32, #tpu.memory_space<vmem>>, vector<1x32xf32>
    %135 = vector.broadcast %134 : vector<1x32xf32> to vector<8x32xf32>
    %136 = arith.addf %133, %135 : vector<8x32xf32>
    %137 = arith.addf %136, %94 : vector<8x32xf32>
    %c0_56 = arith.constant 0 : index
    %c0_57 = arith.constant 0 : index
    %c0_58 = arith.constant 0 : index
    %138 = vector.load %arg13[%c0_56, %c0_57, %c0_58] : memref<1x8x32xf32, #tpu.memory_space<vmem>>, vector<1x8x32xf32>
    %139 = vector.shape_cast %138 : vector<1x8x32xf32> to vector<8x32xf32>
    %140 = vector.shape_cast %137 : vector<8x32xf32> to vector<1x8x32xf32>
    tpu.vector_store %arg13[%c0_56, %c0_57, %c0_58], %140 {strides = array<i32>} : memref<1x8x32xf32, #tpu.memory_space<vmem>>, vector<1x8x32xf32>,
    return
  }
  func.func @transform_0(%arg0: i32) -> (i32, i32, i32) {
    %c0_i32 = arith.constant 0 : i32
    %c0_i32_0 = arith.constant 0 : i32
    %c0_i32_1 = arith.constant 0 : i32
    return %arg0, %c0_i32, %c0_i32_0 : i32, i32, i32
  }
  func.func @transform_1(%arg0: i32) -> (i32, i32) {
    %c0_i32 = arith.constant 0 : i32
    %c0_i32_0 = arith.constant 0 : i32
    %c0_i32_1 = arith.constant 0 : i32
    return %c0_i32, %c0_i32_0 : i32, i32
  }
  func.func @transform_2(%arg0: i32) -> (i32, i32) {
    %c0_i32 = arith.constant 0 : i32
    %c0_i32_0 = arith.constant 0 : i32
    %c0_i32_1 = arith.constant 0 : i32
    return %c0_i32, %c0_i32_0 : i32, i32
  }
  func.func @transform_3(%arg0: i32) -> (i32, i32) {
    %c0_i32 = arith.constant 0 : i32
    %c0_i32_0 = arith.constant 0 : i32
    %c0_i32_1 = arith.constant 0 : i32
    return %c0_i32, %c0_i32_0 : i32, i32
  }
  func.func @transform_4(%arg0: i32) -> (i32, i32) {
    %c0_i32 = arith.constant 0 : i32
    %c0_i32_0 = arith.constant 0 : i32
    %c0_i32_1 = arith.constant 0 : i32
    return %c0_i32, %c0_i32_0 : i32, i32
  }
  func.func @transform_5(%arg0: i32) -> (i32, i32) {
    %c0_i32 = arith.constant 0 : i32
    %c0_i32_0 = arith.constant 0 : i32
    %c0_i32_1 = arith.constant 0 : i32
    return %c0_i32, %c0_i32_0 : i32, i32
  }
  func.func @transform_6(%arg0: i32) -> (i32, i32) {
    %c0_i32 = arith.constant 0 : i32
    %c0_i32_0 = arith.constant 0 : i32
    %c0_i32_1 = arith.constant 0 : i32
    return %c0_i32, %c0_i32_0 : i32, i32
  }
  func.func @transform_7(%arg0: i32) -> (i32, i32) {
    %c0_i32 = arith.constant 0 : i32
    %c0_i32_0 = arith.constant 0 : i32
    %c0_i32_1 = arith.constant 0 : i32
    return %c0_i32, %c0_i32_0 : i32, i32
  }
  func.func @transform_8(%arg0: i32) -> (i32, i32) {
    %c0_i32 = arith.constant 0 : i32
    %c0_i32_0 = arith.constant 0 : i32
    %c0_i32_1 = arith.constant 0 : i32
    return %c0_i32, %c0_i32_0 : i32, i32
  }
  func.func @transform_9(%arg0: i32) -> (i32, i32) {
    %c0_i32 = arith.constant 0 : i32
    %c0_i32_0 = arith.constant 0 : i32
    %c0_i32_1 = arith.constant 0 : i32
    return %c0_i32, %c0_i32_0 : i32, i32
  }
  func.func @transform_10(%arg0: i32) -> (i32, i32) {
    %c0_i32 = arith.constant 0 : i32
    %c0_i32_0 = arith.constant 0 : i32
    %c0_i32_1 = arith.constant 0 : i32
    return %c0_i32, %c0_i32_0 : i32, i32
  }
  func.func @transform_11(%arg0: i32) -> (i32, i32) {
    %c0_i32 = arith.constant 0 : i32
    %c0_i32_0 = arith.constant 0 : i32
    %c0_i32_1 = arith.constant 0 : i32
    return %c0_i32, %c0_i32_0 : i32, i32
  }
  func.func @transform_12(%arg0: i32) -> (i32, i32, i32) {
    %c0_i32 = arith.constant 0 : i32
    %c0_i32_0 = arith.constant 0 : i32
    %c0_i32_1 = arith.constant 0 : i32
    return %arg0, %c0_i32, %c0_i32_0 : i32, i32, i32
  }
}

</mosaic_0001>

<bundles_post_ra>
// kernel: tpu_custom_call.1
= control target key start
LH: loop header
LB: loop body
LE: loop exit
PB: predicated region body
PF: predicated region fallthrough
CT: control target
= control target key end

     0   :  { %s2748_s0 = inlined_call_operand.hbm [shape: f32[2,8,32], index: 0, kind: input, shape index: {}]   ;;  %s2749_s1 = inlined_call_operand.vmem [shape: f32[1,32], index: 1, kind: input, shape index: {}]   ;;  %s2750_s2 = inlined_call_operand.vmem [shape: f32[1,32], index: 2, kind: input, shape index: {}]   ;;  %s2751_s3 = inlined_call_operand.vmem [shape: f32[32,192], index: 3, kind: input, shape index: {}]   ;;  %s2752_s4 = inlined_call_operand.vmem [shape: f32[64,32], index: 4, kind: input, shape index: {}]   ;;  %s2753_s5 = inlined_call_operand.hbm [shape: f32[1,32], index: 5, kind: input, shape index: {}]   ;;  %s2754_s6 = inlined_call_operand.hbm [shape: f32[1,32], index: 6, kind: input, shape index: {}]   ;;  %s2755_s7 = inlined_call_operand.hbm [shape: f32[1,32], index: 7, kind: input, shape index: {}]   ;;  %s2756_s8 = inlined_call_operand.vmem [shape: f32[32,32], index: 8, kind: input, shape index: {}]   ;;  %s2757_s9 = inlined_call_operand.hbm [shape: f32[1,32], index: 9, kind: input, shape index: {}]   ;;  %s2758_s10 = inlined_call_operand.vmem [shape: f32[32,32], index: 10, kind: input, shape index: {}]   ;;  %s2759_s11 = inlined_call_operand.vmem [shape: f32[1,32], index: 11, kind: input, shape index: {}]   ;;  %s2760_s12 = inlined_call_operand.hbm [shape: f32[2,8,32], index: 12, kind: output, shape index: {}]  }
   0x1   :  { %2766 = sst [smem:[#allocation16_spill]] %s2753_s5 }
   0x2   :  { %2767 = sst [smem:[#allocation17_spill]] %s2754_s6 }
   0x3   :  { %2768 = sst [smem:[#allocation18_spill]] %s2758_s10 }
   0x4   :  { %2769 = sst [smem:[#allocation19_spill]] %s2759_s11 }
   0x5   :  { %2770 = sst [smem:[#allocation20_spill]] %s2760_s12 }
   0x6   :  { %17 = vsyncpa [#allocation3], 0 }
   0x7   :  { %19 = vsyncpa [#allocation3 + $0x1], 0 }
   0x8   :  { %20 = vsyncpa [#allocation6], 0 }
   0x9   :  { %21 = vsyncpa [#allocation9], 0 }
   0xa   :  { %22 = vsyncpa [#allocation4], 0 }
   0xb   :  { %24 = vsyncpa [#allocation4 + $0x1], 0  ;;  %s2293_s21 = smov 0   ;;  %s2295_s22 = smov 0  }
   0xc   :  { %s2297_s23 = smov 0   ;;  %s2299_s24 = smov 0  }
   0xd LB: > { %s2212_s25 = smov [#allocation5]   ;;  %s2314_s27 = sadd.s32 4294967295, %s2210_s24   ;;  %s2210_s24 = sphi %s2299_s24, %s2796_s24   ;;  %s2206_s23 = sphi %s2297_s23, %s2795_s23   ;;  %s2202_s22 = sphi %s2295_s22, %s2794_s22   ;;  %s2198_s21 = sphi %s2293_s21, %s2793_s21  }
   0xe   : > { %s343_s26 = sshll.u32 %s2212_s25, 4  ;;  %p1685_p0 = scmp.ge.s32.totalorder %s2210_s24, 1  ;;  %s2319_s26 = int_to_ptr.vmem [resolvable:$true] %s343_s26 }
   0xf   : > { %p2763_p1 = scmp.eq.s32.totalorder %s2314_s27, 0  ;;  %p318_p2 = scmp.lt.s32.totalorder %s2210_s24, 3 }
  0x10   : > { %s2213_s29 = smov [#allocation8]   ;;  %s2214_s13 = smov [#allocation7]  }
  0x11   : > { %p2321_p3 = pnand %p1685_p0, %p318_p2  ;;  %s365_s30 = sshll.u32 %s2213_s29, 4  ;;  %s2328_s30 = int_to_ptr.vmem [resolvable:$true] %s365_s30 }
  0x12   : > { %s354_s14 = sshll.u32 %s2214_s13, 4  ;;  %s2215_s16 = smov [#allocation10]   ;;  %s2336_s14 = int_to_ptr.vmem [resolvable:$true] %s354_s14 }
  0x13   : > { %s2771_s28 = scalar_select %p2321_p3, 1, 0 }
  0x14   : > { %p1895_p5 = pneg %p2321_p3  ;;  %s2338_s17 = sshll.u32 %s2215_s16, 4  ;;  %s380_s17 = int_to_ptr.vmem [resolvable:$true] %s2338_s17 }
  0x15   : > { %s2773_s5 = sld [smem:[#allocation16_spill]] }
  0x16   : > { %p2332_p6 = pnand %p1895_p5, %p2763_p1 }
  0x18   : > { %p2348_p8 = pneg %p2332_p6 }
  0x1b   : > { %s1994_s20 = scalar_lea.hbm %s2773_s5, 16 }
  0x1c   : > { %p1995_p7 = scmp.ne.s32.totalorder %s2773_s5, %s1994_s20  ;;  %p2001_p11 = scmp.lt.u32.totalorder %s1994_s20, %s2773_s5 }
  0x1e   : > { %p1997_p9 = pnand %p2348_p8, %p1995_p7 }
  0x20   : > { %p1998_p10 = pneg %p1997_p9 }
  0x22   : > { %p2003_p12 = pnand %p2001_p11, %p1998_p10 }
  0x24   : > { %2006 = shalt.err (!%p2003_p12)
}
  0x25   : > { %s2007_s18 = scalar_lea.vmem %s2319_s26, 16  ;;  %s2014_s19 = scalar_lea.vmem %s2319_s26, 32 }
  0x26   : > { %p2008_p13 = scmp.ne.s32.totalorder %s2319_s26, %s2007_s18  ;;  %p2015_p5 = scmp.lt.s32.totalorder %s2319_s26, %s2319_s26 }
  0x27   : > { %p2016_p7 = scmp.lt.s32.totalorder %s2014_s19, %s2007_s18 }
  0x28   : > { %p2010_p0 = pnand %p2008_p13, %p2348_p8 }
  0x29   : > { %p2017_p9 = por %p2016_p7, %p2015_p5 }
  0x2a   : > { %p2011_p2 = pneg %p2010_p0 }
  0x2c   : > { %p2018_p4 = pnand %p2017_p9, %p2011_p2 }
  0x2e   : > { %2021 = shalt.err (!%p2018_p4)
}
  0x2f   : > { %1898 = dma.hbm_to_vmem [thread:$0]  (!%p2332_p6), %s2773_s5, 16, %s2319_s26, [#allocation6]  }
  0x30   : > { %s2022_s16 = scalar_lea.hbm %s2755_s7, 16 }
  0x31   : > { %p2023_p10 = scmp.ne.s32.totalorder %s2755_s7, %s2022_s16  ;;  %p2029_p4 = scmp.lt.u32.totalorder %s2022_s16, %s2755_s7 }
  0x33   : > { %p2025_p11 = pnand %p2023_p10, %p2348_p8 }
  0x35   : > { %p2026_p12 = pneg %p2025_p11 }
  0x37   : > { %p2031_p13 = pnand %p2029_p4, %p2026_p12 }
  0x39   : > { %2034 = shalt.err (!%p2031_p13)
}
  0x3a   : > { %s2035_s26 = scalar_lea.vmem %s2328_s30, 16  ;;  %s2042_s10 = scalar_lea.vmem %s2328_s30, 32 }
  0x3b   : > { %p2036_p0 = scmp.ne.s32.totalorder %s2328_s30, %s2035_s26  ;;  %p2043_p7 = scmp.lt.s32.totalorder %s2328_s30, %s2328_s30 }
  0x3c   : > { %p2044_p9 = scmp.lt.s32.totalorder %s2042_s10, %s2035_s26 }
  0x3d   : > { %p2038_p2 = pnand %p2036_p0, %p2348_p8 }
  0x3e   : > { %p2045_p10 = por %p2044_p9, %p2043_p7 }
  0x3f   : > { %p2039_p5 = pneg %p2038_p2 }
  0x41   : > { %p2046_p11 = pnand %p2045_p10, %p2039_p5 }
  0x43   : > { %2049 = shalt.err (!%p2046_p11)
}
  0x44   : > { %1904 = dma.hbm_to_vmem [thread:$0]  (!%p2332_p6), %s2755_s7, 16, %s2328_s30, [#allocation9]  }
  0x45   : > { %s2775_s6 = sld [smem:[#allocation17_spill]] }
  0x4b   : > { %s2050_s29 = scalar_lea.hbm %s2775_s6, 16 }
  0x4c   : > { %p2051_p12 = scmp.ne.s32.totalorder %s2775_s6, %s2050_s29  ;;  %p2057_p0 = scmp.lt.u32.totalorder %s2050_s29, %s2775_s6 }
  0x4e   : > { %p2053_p4 = pnand %p2051_p12, %p2348_p8 }
  0x50   : > { %p2054_p13 = pneg %p2053_p4 }
  0x52   : > { %p2059_p2 = pnand %p2057_p0, %p2054_p13 }
  0x54   : > { %2062 = shalt.err (!%p2059_p2)
}
  0x55   : > { %s2063_s30 = scalar_lea.vmem %s2336_s14, 16  ;;  %s2070_s10 = scalar_lea.vmem %s2336_s14, 32 }
  0x56   : > { %p2064_p5 = scmp.ne.s32.totalorder %s2336_s14, %s2063_s30  ;;  %p2071_p10 = scmp.lt.s32.totalorder %s2336_s14, %s2336_s14 }
  0x57   : > { %p2072_p11 = scmp.lt.s32.totalorder %s2070_s10, %s2063_s30 }
  0x58   : > { %p2066_p7 = pnand %p2064_p5, %p2348_p8 }
  0x59   : > { %p2073_p12 = por %p2072_p11, %p2071_p10 }
  0x5a   : > { %p2067_p9 = pneg %p2066_p7 }
  0x5c   : > { %p2074_p4 = pnand %p2073_p12, %p2067_p9 }
  0x5e   : > { %2077 = shalt.err (!%p2074_p4)
}
  0x5f   : > { %1901 = dma.hbm_to_vmem [thread:$0]  (!%p2332_p6), %s2775_s6, 16, %s2336_s14, [#allocation6]  }
  0x60   : > { %s2078_s29 = scalar_lea.hbm %s2757_s9, 16 }
  0x61   : > { %p2079_p13 = scmp.ne.s32.totalorder %s2757_s9, %s2078_s29  ;;  %p2085_p5 = scmp.lt.u32.totalorder %s2078_s29, %s2757_s9 }
  0x63   : > { %p2081_p0 = pnand %p2079_p13, %p2348_p8 }
  0x65   : > { %p2082_p2 = pneg %p2081_p0 }
  0x67   : > { %p2087_p7 = pnand %p2085_p5, %p2082_p2 }
  0x69   : > { %2090 = shalt.err (!%p2087_p7)
}
  0x6a   : > { %s2091_s30 = scalar_lea.vmem %s380_s17, 16  ;;  %s2098_s14 = scalar_lea.vmem %s380_s17, 32 }
  0x6b   : > { %p2092_p9 = scmp.ne.s32.totalorder %s380_s17, %s2091_s30  ;;  %p2099_p12 = scmp.lt.s32.totalorder %s380_s17, %s380_s17 }
  0x6c   : > { %p2100_p4 = scmp.lt.s32.totalorder %s2098_s14, %s2091_s30 }
  0x6d   : > { %p2094_p10 = pnand %p2092_p9, %p2348_p8 }
  0x6e   : > { %p2101_p1 = por %p2100_p4, %p2099_p12 }
  0x6f   : > { %p2095_p11 = pneg %p2094_p10 }
  0x71   : > { %p2102_p3 = pnand %p2101_p1, %p2095_p11 }
  0x73   : > { %2105 = shalt.err (!%p2102_p3)
}
  0x74   : > { %1907 = dma.hbm_to_vmem [thread:$0]  (!%p2332_p6), %s2757_s9, 16, %s380_s17, [#allocation9]  }
  0x75   : > { %s1684_s13 = sadd.s32 4294967294, %s2210_s24   ;;  %s2439_s15 = sadd.s32 1, %s2210_s24  }
  0x76   : > { %s34_s12 = ssub.s32 %s2210_s24, %s2439_s15  ;;  %s37_s20 = sadd.s32 1, %s2206_s23 }
  0x77   : > { %p35_p1 = scmp.eq.s32.totalorder %s34_s12, 0  ;;  %p44_p3 = scmp.ne.s32.totalorder %s2206_s23, %s2202_s22 }
  0x78   : > { %p45_p8 = scmp.eq.s32.totalorder %s2210_s24, 0  ;;  %p50_p13 = scmp.ne.s32.totalorder %s2202_s22, %s2198_s21 }
  0x79   : > { %s2450_s25 = scalar_select %p35_p1, %s2206_s23, %s37_s20  }
  0x7a   : > { %p2452_p0 = por %p45_p8, %p44_p3  ;;  %p2777_p2 = scmp.eq.s32.totalorder %s2314_s27, 0 }
  0x7b   : > { %p305_p5 = scmp.eq.s32.totalorder %s2314_s27, 1  ;;  %p311_p7 = scmp.eq.s32.totalorder %s1684_s13, 1 }
  0x7c   : > { %p2458_p6 = por %p2777_p2, %p50_p13  ;;  %p1920_p9 = scmp.lt.s32.totalorder %s2210_s24, 2 }
  0x7d   : > { %s396_s16 = sand.u32 1, %s2206_s23   ;;  %p2465_p10 = por %p305_p5, %p44_p3 }
  0x7e   : > { %p2469_p11 = por %p311_p7, %p50_p13  ;;  %s1691_s26 = sshll.u32 %s396_s16, 3 }
  0x7f   : > { %s2779_s18 = scalar_select %p2465_p10, 1, 0 }
  0x80   : > { %s2780_s19 = scalar_select %p2469_p11, 1, 0 }
  0x81   : > { %s1692_s30 = sshll.u32 %s2210_s24, 7  ;;  %s400_s13 = scalar_lea.vmem [#allocation2], %s1691_s26 }
  0x82   : > { %s2477_s11 = scalar_lea.hbm %s2748_s0, %s1692_s30  ;;  %s407_s12 = sshll.u32 %s400_s13, 4  ;;  %s2479_s12 = int_to_ptr.vmem [resolvable:$true] %s407_s12 }
  0x83   : > { %p2483_p12 = pnand %p1920_p9, %p2452_p0  ;;  %s397_s5 = scalar_lea.sflag [#allocation3], %s396_s16 }
  0x84   : > { %s2106_s6 = scalar_lea.hbm %s2477_s11, 128  ;;  %s2111_s14 = scalar_lea.hbm %s2748_s0, 256 }
  0x85   : > { %p2107_p4 = scmp.ne.s32.totalorder %s2477_s11, %s2106_s6  ;;  %p2108_p1 = pneg %p2483_p12 }
  0x86   : > { %p2112_p13 = scmp.lt.u32.totalorder %s2477_s11, %s2748_s0  ;;  %p2113_p0 = scmp.lt.u32.totalorder %s2111_s14, %s2106_s6 }
  0x87   : > { %p2109_p3 = pnand %p2108_p1, %p2107_p4  ;;  %p2115_p5 = scmp.lt.u32.totalorder %s2106_s6, %s2477_s11 }
  0x88   : > { %p2114_p2 = por %p2113_p0, %p2112_p13 }
  0x89   : > { %p2110_p8 = pneg %p2109_p3 }
  0x8a   : > { %p2116_p7 = por %p2115_p5, %p2114_p2 }
  0x8c   : > { %p2117_p9 = pnand %p2116_p7, %p2110_p8 }
  0x8e   : > { %2120 = shalt.err (!%p2117_p9)
}
  0x8f   : > { %s2121_s16 = scalar_lea.vmem %s2479_s12, 128  ;;  %s2216_s13 = smov [#allocation2]  }
  0x90   : > { %p2122_p4 = scmp.ne.s32.totalorder %s2479_s12, %s2121_s16  ;;  %s2126_s26 = sshll.u32 %s2216_s13, 4  ;;  %s2127_s26 = int_to_ptr.vmem [resolvable:$false] %s2126_s26 }
  0x91   : > { %s2128_s30 = scalar_lea.vmem %s2127_s26, 256  ;;  %p2129_p10 = scmp.lt.s32.totalorder %s2479_s12, %s2127_s26 }
  0x92   : > { %p2124_p3 = pnand %p2122_p4, %p2108_p1  ;;  %p2130_p13 = scmp.lt.s32.totalorder %s2128_s30, %s2121_s16 }
  0x94   : > { %p2125_p11 = pneg %p2124_p3  ;;  %p2131_p0 = por %p2130_p13, %p2129_p10 }
  0x96   : > { %p2132_p2 = pnand %p2131_p0, %p2125_p11 }
  0x98   : > { %2135 = shalt.err (!%p2132_p2)
}
  0x99   : > { %1911 = dma.hbm_to_vmem [thread:$0]  (!%p2483_p12), %s2477_s11, 128, %s2479_s12, %s397_s5  }
  0x9a   : > { %p2782_p8 = scmp.ne.s32.totalorder %s2771_s28, 0 }
  0x9b   : > { %s2515_s6 = sand.u32 (!%p2782_p8), 1, %s2202_s22  }
  0x9c   : > { %416 = sbr.rel (%p2782_p8) target bundleno = 2521 (0x9d9), region = 68  ;;  %s1694_s14 = sshll.u32 (!%p2782_p8), %s2515_s6, 3 }
  0x9d   : > { %s419_s29 = scalar_lea.sflag (!%p2782_p8), [#allocation3], %s2515_s6  ;;  %s422_s10 = scalar_lea.vmem (!%p2782_p8), [#allocation2], %s1694_s14 }
  0xa3   : > { %2181 = dma.done.wait (%p2458_p6), %s419_s29, 128  }
  0xa4   : > { %2183 = vsyncadd (%p2458_p6), %s419_s29, 4294967168  ;;  %p2783_p10 = scmp.eq.s32.totalorder %s2314_s27, 0 }
  0xa6   : > { %2185 = dma.done.wait (%p2783_p10), [#allocation6], 32   ;;  %p2784_p11 = pmov %p2783_p10 }
  0xa7   : > { %p2785_p12 = pmov %p2783_p10 }
  0xa8   : > { %2187 = vsyncadd (%p2784_p11), [#allocation6], 4294967264 }
  0xa9   : > { %2189 = dma.done.wait (%p2785_p12), [#allocation9], 32   ;;  %p2786_p1 = pmov %p2783_p10 }
  0xaa   : > { %vm482_vm0 = vcmask 261120   ;;  %v2533_v0 = vld [vmem:[%s422_s10] sm:$0xff]  ;;  %v514_v8 = vld [vmem:[%s2751_s3 + $0x18] sm:$0xff]  ;;  %v513_v11 = vld [vmem:[%s2751_s3 + $0x10] sm:$0xff]  ;;  %v2217_v14 = vmov 0.0   ;;  %vm2218_vm1 = vmmov 0  }
  0xab   : > { %2191 = vsyncadd (%p2786_p1), [#allocation9], 4294967264  ;;  %v483_v1 = vsel %vm482_vm0, %v2533_v0, 0.0  ;;  %v512_v7 = vld [vmem:[%s2751_s3 + $0x8] sm:$0xff]  ;;  %v511_v9 = vld [vmem:[%s2751_s3] sm:$0xff]  ;;  %586 = vmatprep.mubr.f32.mxu0 %v2217_v14  ;;  %1762 = vmatprep.subr.mxu1 %v2217_v14  ;;  %s2219_s26 = smov 112  }
  0xac   : > { %484 = vadd.xlane.f32.xlu0 %v483_v1  ;;  %v1843_v10 = vpack.c.bf16 %v514_v8, %v512_v7  ;;  %v516_v12 = vld [vmem:[%s2751_s3 + $0x28] sm:$0xff]  ;;  %v518_v13 = vld [vmem:[%s2751_s3 + $0x38] sm:$0xff]  ;;  %v1845_v15 = vpack.c.bf16 %v513_v11, %v511_v9  ;;  %v515_v17 = vld [vmem:[%s2751_s3 + $0x20] sm:$0xff]  ;;  %1764 = vmatprep.mubr.msk.f32.mxu1 %vm2218_vm1, %v2217_v14  ;;  %s2220_s30 = smov 64   ;;  %s2221_s29 = smov 48   ;;  %vm596_vm2 = vcmask 130048  }
  0xad   : > { %v1847_v16 = vpack.c.bf16 %v518_v13, %v516_v12  ;;  %v517_v18 = vld [vmem:[%s2751_s3 + $0x30] sm:$0xff]  ;;  %v1700_v24 = vld [vmem:[%s2749_s1] ss:$0 sm:$0xff]  ;;  %s2222_s10 = smov 32   ;;  %s2223_s5 = smov 96   ;;  %vm671_vm3 = vcmask 64512  }
  0xae   : > { %1844 = vmatprep.subr.bf16.mxu0 %v1843_v10  ;;  %v1849_v19 = vpack.c.bf16 %v517_v18, %v515_v17  ;;  %v1701_v26 = vld [vmem:[%s2750_s2] ss:$0 sm:$0xff]  ;;  %s2224_s28 = smov 16   ;;  %s2225_s17 = smov 80   ;;  %v1269_v11 = vld [vmem:[%s2752_s4 + $0x8] sm:$0xff]  ;;  %v2226_v12 = vmov 0.0|0.0  }
  0xaf   : > { %1846 = vmatpush1.bf16.msra.mxu0 %v1845_v15  ;;  %v1268_v10 = vld [vmem:[%s2752_s4] sm:$0xff]  ;;  %v1271_v17 = vld [vmem:[%s2752_s4 + $0x18] sm:$0xff]  ;;  %vm1266_vm4 = vcmask 392192   ;;  %vm1283_vm5 = vcmask 523264   ;;  %s2788_s20 = sld [smem:[#allocation19_spill]]  ;;  %s1724_s16 = sshll.u32 %s2314_s27, 7 }
  0xb0   : > { %1848 = vmatprep.subr.bf16.mxu0 %v1847_v16  ;;  %v1852_v13 = vpack.c.bf16 %v1269_v11, %v1268_v10  ;;  %v1270_v16 = vld [vmem:[%s2752_s4 + $0x10] sm:$0xff]  ;;  %s478_s13 = scalar_lea.vmem [#allocation11], %s1694_s14  ;;  %p2790_p5 = scmp.ne.s32.totalorder %s2779_s18, 0 }
  0xb1   : > { %v1855_v18 = vpack.c.bf16 %v1271_v17, %v1270_v16  ;;  %s2227_s14 = smov [#allocation11]  }
  0xb2   : > { %s2140_s11 = sshll.u32 %s2227_s14, 4  ;;  %s2141_s11 = int_to_ptr.vmem [resolvable:$false] %s2140_s11 }
  0xb3   : > { %1850 = vmatpush1.bf16.msra.mxu0 %v1849_v19  ;;  %s2142_s12 = scalar_lea.vmem %s2141_s11, 256 }
  0xb4   : > { %1772 = vmatprep.subr.mxu0 %v2217_v14 }
 0x139   : > { %v485_v2 = vpop.xlane.xlu0 %484 }
 0x13a   : > { %v487_v3 = vmul.f32 0.03125, %v485_v2 }
 0x13c   : > { %v488_v4 = vsub.f32 %v2533_v0, %v487_v3 }
 0x13e   : > { %v489_v5 = vmul.f32 %v488_v4, %v488_v4 }
 0x140   : > { %v490_v6 = vsel %vm482_vm0, %v489_v5, 0.0 }
 0x141   : > { %491 = vadd.xlane.f32.xlu0 %v490_v6 }
 0x1ce   : > { %v492_v20 = vpop.xlane.xlu0 %491 }
 0x1cf   : > { %v493_v21 = vmul.f32 0.03125, %v492_v20  ;;  %v1272_v20 = vld [vmem:[%s2752_s4 + $0x20] sm:$0xff] }
 0x1d1   : > { %v494_v22 = vadd.f32 1e-05, %v493_v21  ;;  %v1273_v21 = vld [vmem:[%s2752_s4 + $0x28] sm:$0xff] }
 0x1d3   : > { %1972 = vrsqrt.f32 %v494_v22  ;;  %v1274_v22 = vld [vmem:[%s2752_s4 + $0x30] sm:$0xff] }
 0x1dd   : > { %v1973_v23 = vpop.eup %1972 }
 0x1de   : > { %v496_v25 = vmul.f32 %v1973_v23, %v488_v4 }
 0x1e0   : > { %v503_v27 = vmul.f32 %v1700_v24, %v496_v25  ;;  %v1858_v24 = vpack.c.bf16 %v1273_v21, %v1272_v20  ;;  %v1275_v25 = vld [vmem:[%s2752_s4 + $0x38] sm:$0xff] }
 0x1e2   : > { %v510_v28 = vadd.f32 %v1701_v26, %v503_v27  ;;  %v1861_v27 = vpack.c.bf16 %v1275_v25, %v1274_v22 }
 0x1e4   : > { %1702 = vmatmul.mubr.msk.f32.vlgmr.msra.gmra.mrb[0].mxu0 %vm482_vm0, %v510_v28 }
 0x1e5   : > { %1774 = vmatprep.mubr.msk.f32.mxu0 %vm2218_vm1, %v2217_v14 }
 0x2b7   : > { %v588_v29 = vpop.f32.mrb[0].mxu0 }
 0x2b8   : > { %756 = vrot.lane.b32.xlu0 %v588_v29, %s2219_s26  ;;  %594 = vrot.lane.b32.xlu1 %v588_v29, %s2220_s30  ;;  %v590_v30 = vpop.f32.mrb[1].mxu0  ;;  %s1576_s30 = sshll.u32 %s478_s13, 4  ;;  %s2705_s30 = int_to_ptr.vmem [resolvable:$true] %s1576_s30 }
 0x2b9   : > { %s2136_s27 = scalar_lea.vmem %s2705_s30, 128  ;;  %p2143_p4 = scmp.lt.s32.totalorder %s2705_s30, %s2141_s11 }
 0x2ba   : > { %p2137_p6 = scmp.ne.s32.totalorder %s2705_s30, %s2136_s27  ;;  %p2144_p3 = scmp.lt.s32.totalorder %s2142_s12, %s2136_s27 }
 0x2bc   : > { %758 = vrot.lane.b32.xlu1 %v588_v29, %s2221_s29  ;;  %p2138_p7 = pnand %p2137_p6, %p2790_p5  ;;  %p2145_p13 = por %p2144_p3, %p2143_p4 }
 0x2be   : > { %p2139_p9 = pneg %p2138_p7 }
 0x2c0   : > { %924 = vrot.lane.b32.xlu1 %v588_v29, %s2222_s10  ;;  %p2146_p0 = pnand %p2145_p13, %p2139_p9 }
 0x2c4   : > { %922 = vrot.lane.b32.xlu1 %v588_v29, %s2223_s5 }
 0x2c8   : > { %1089 = vrot.lane.b32.xlu1 %v588_v29, %s2224_s28 }
 0x2cc   : > { %1087 = vrot.lane.b32.xlu1 %v588_v29, %s2225_s17 }
 0x2d0   : > { %844 = vrot.lane.b32.xlu1 %v590_v30, %s2219_s26  ;;  %s2787_s26 = sld [smem:[#allocation18_spill]] }
 0x2d6   : > { %v1478_v17 = vld [vmem:[%s2787_s26 + $0x10] sm:$0xff] }
 0x32a   : > { %v595_v31 = vpop.permute.xlu1 %594  ;;  %v757_v33 = vpop.permute.xlu0 %756 }
 0x32b   : > { %1763 = vmatpush3.xpose.msk.msra.mxu1 %vm596_vm2, %v595_v31 }
 0x32c   : > { %1767 = vmatprep.subr.mxu1 %v2217_v14 }
 0x32e   : > { %1765 = vmatmul.mubr.msk.f32.vlgmr.msra.gmra.mrb[0].mxu1 %vm596_vm2, %v588_v29  ;;  %v759_v32 = vpop.permute.xlu1 %758 }
 0x32f   : > { %1768 = vmatpush3.msra.mxu1 %v590_v30  ;;  %1773 = vmatpush3.xpose.msk.msra.mxu0 %vm596_vm2, %v759_v32 }
 0x330   : > { %1782 = vmatprep.subr.mxu0 %v2217_v14  ;;  %1769 = vmatprep.mubr.msk.f32.mxu1 %vm2218_vm1, %v2217_v14 }
 0x331   : > { %1777 = vmatprep.subr.mxu1 %v2217_v14 }
 0x332   : > { %1775 = vmatmul.mubr.msk.f32.vlgmr.msra.gmra.mrb[2].mxu0 %vm596_vm2, %v757_v33  ;;  %v925_v34 = vpop.permute.xlu1 %924 }
 0x333   : > { %1783 = vmatpush3.xpose.msk.msra.mxu0 %vm596_vm2, %v925_v34  ;;  %1784 = vmatprep.mubr.msk.f32.mxu0 %vm2218_vm1, %v2217_v14 }
 0x334   : > { %1792 = vmatprep.subr.mxu0 %v2217_v14 }
 0x336   : > { %v923_v35 = vpop.permute.xlu1 %922 }
 0x337   : > { %1785 = vmatmul.mubr.msk.f32.vlgmr.msra.gmra.mrb[4].mxu0 %vm596_vm2, %v923_v35 }
 0x338   : > { %1794 = vmatprep.mubr.msk.f32.mxu0 %vm2218_vm1, %v2217_v14 }
 0x33a   : > { %v1090_v36 = vpop.permute.xlu1 %1089 }
 0x33b   : > { %1793 = vmatpush3.xpose.msk.msra.mxu0 %vm596_vm2, %v1090_v36 }
 0x33c   : > { %1851 = vmatprep.subr.bf16.mxu0 %v2226_v12 }
 0x33e   : > { %v1088_v37 = vpop.permute.xlu1 %1087 }
 0x33f   : > { %1795 = vmatmul.mubr.msk.f32.vlgmr.msra.gmra.mrb[6].mxu0 %vm596_vm2, %v1088_v37 }
 0x340   : > { %1818 = vmatprep.mubr.msk.f32.mxu0 %vm2218_vm1, %v2217_v14  ;;  %1853 = vmatpush3.bf16.msra.mxu0 %v1852_v13  ;;  %v1476_v13 = vld [vmem:[%s2787_s26] sm:$0xff] }
 0x341   : > { %1854 = vmatprep.subr.bf16.mxu0 %v2226_v12 }
 0x342   : > { %v845_v50 = vpop.permute.xlu1 %844 }
 0x344   : > { %1856 = vmatpush3.bf16.msra.mxu0 %v1855_v18 }
 0x345   : > { %1857 = vmatprep.subr.bf16.mxu0 %v2226_v12 }
 0x348   : > { %1859 = vmatpush3.bf16.msra.mxu0 %v1858_v24 }
 0x349   : > { %1860 = vmatprep.subr.bf16.mxu0 %v2226_v12 }
 0x34c   : > { %1862 = vmatpush3.bf16.msra.mxu0 %v1861_v27  ;;  %v1721_v27 = vld [vmem:[%s2788_s20] ss:$0 sm:$0xff] }
 0x401   : > { %v667_v38 = vpop.f32.mrb[0].mxu1 }
 0x402   : > { %v1766_v39 = vpop.f32.mrb[1].mxu1  ;;  %v672_v40 = vsel %vm671_vm3, %v667_v38, -inf }
 0x403   : > { %673 = vmax.xlane.f32.xlu1 %v672_v40 }
 0x405   : > { %v830_v41 = vpop.f32.mrb[2].mxu0 }
 0x406   : > { %v1776_v42 = vpop.f32.mrb[3].mxu0  ;;  %v834_v43 = vsel %vm671_vm3, %v830_v41, -inf }
 0x407   : > { %835 = vmax.xlane.f32.xlu0 %v834_v43 }
 0x40a   : > { %v996_v44 = vpop.f32.mrb[4].mxu0 }
 0x40b   : > { %v1786_v45 = vpop.f32.mrb[5].mxu0  ;;  %v1000_v46 = vsel %vm671_vm3, %v996_v44, -inf }
 0x40c   : > { %1001 = vmax.xlane.f32.xlu1 %v1000_v46 }
 0x412   : > { %v1161_v47 = vpop.f32.mrb[6].mxu0 }
 0x413   : > { %v1796_v48 = vpop.f32.mrb[7].mxu0  ;;  %v1165_v49 = vsel %vm671_vm3, %v1161_v47, -inf }
 0x414   : > { %1166 = vmax.xlane.f32.xlu0 %v1165_v49 }
 0x41d   : > { %1174 = vrot.lane.b32.xlu1 %v590_v30, %s2225_s17  ;;  %s1563_s17 = scalar_lea.sflag [#allocation4], %s2515_s6 }
 0x42a   : > { %1009 = vrot.lane.b32.xlu0 %v590_v30, %s2223_s5 }
 0x490   : > { %v674_v51 = vpop.xlane.xlu1 %673 }
 0x491   : > { %v675_v52 = vsub.f32 %v667_v38, %v674_v51 }
 0x493   : > { %v676_v53 = vmul.f32 1.442695, %v675_v52 }
 0x494   : > { %v836_v54 = vpop.xlane.xlu0 %835 }
 0x495   : > { %1974 = vpow2.f32 %v676_v53  ;;  %v837_v55 = vsub.f32 %v830_v41, %v836_v54 }
 0x497   : > { %v838_v56 = vmul.f32 1.442695, %v837_v55 }
 0x499   : > { %1976 = vpow2.f32 %v838_v56  ;;  %v1002_v57 = vpop.xlane.xlu1 %1001 }
 0x49a   : > { %v1003_v58 = vsub.f32 %v996_v44, %v1002_v57 }
 0x49c   : > { %v1004_v59 = vmul.f32 1.442695, %v1003_v58 }
 0x49d   : > { %v1175_v6 = vpop.permute.xlu1 %1174 }
 0x49e   : > { %1978 = vpow2.f32 %v1004_v59 }
 0x49f   : > { %v1975_v60 = vpop.eup %1974 }
 0x4a0   : > { %1770 = vmatmul.mubr.msk.f32.vlgmr.msra.gmra.mrb[2].mxu1 %vm671_vm3, %v1975_v60  ;;  %v678_v5 = vsel %vm671_vm3, %v1975_v60, 0.0 }
 0x4a1   : > { %1778 = vmatpush3.msra.mxu1 %v845_v50  ;;  %v1167_v61 = vpop.xlane.xlu0 %1166  ;;  %1779 = vmatprep.mubr.msk.f32.mxu1 %vm2218_vm1, %v2217_v14  ;;  %v1715_v50 = vld [vmem:[#allocation5] ss:$0 sm:$0xff] }
 0x4a2   : > { %v1168_v62 = vsub.f32 %v1161_v47, %v1167_v61  ;;  %1787 = vmatprep.subr.mxu1 %v2217_v14  ;;  %v1387_v61 = vld [vmem:[%s2756_s8] sm:$0xff] }
 0x4a3   : > { %v1977_v63 = vpop.eup %1976 }
 0x4a4   : > { %v1169_v1 = vmul.f32 1.442695, %v1168_v62  ;;  %1780 = vmatmul.mubr.msk.f32.vlgmr.msra.gmra.mrb[4].mxu1 %vm671_vm3, %v1977_v63  ;;  %v840_v2 = vsel %vm671_vm3, %v1977_v63, 0.0  ;;  %v1388_v62 = vld [vmem:[%s2756_s8 + $0x8] sm:$0xff] }
 0x4a5   : > { %841 = vadd.xlane.f32.xlu1 %v840_v2  ;;  %v1010_v3 = vpop.permute.xlu0 %1009  ;;  %1789 = vmatprep.mubr.msk.f32.mxu1 %vm2218_vm1, %v2217_v14  ;;  %v1864_v63 = vpack.c.bf16 %v1388_v62, %v1387_v61 }
 0x4a6   : > { %1980 = vpow2.f32 %v1169_v1  ;;  %1788 = vmatpush3.msra.mxu1 %v1010_v3  ;;  %v1390_v1 = vld [vmem:[%s2756_s8 + $0x18] sm:$0xff] }
 0x4a7   : > { %1797 = vmatprep.subr.mxu1 %v2217_v14 }
 0x4a8   : > { %v1979_v4 = vpop.eup %1978 }
 0x4a9   : > { %679 = vadd.xlane.f32.xlu1 %v678_v5  ;;  %1790 = vmatmul.mubr.msk.f32.vlgmr.msra.gmra.mrb[6].mxu1 %vm671_vm3, %v1979_v4  ;;  %v1006_v7 = vsel %vm671_vm3, %v1979_v4, 0.0 }
 0x4aa   : > { %1798 = vmatpush3.msra.mxu1 %v1175_v6  ;;  %1007 = vadd.xlane.f32.xlu0 %v1006_v7  ;;  %v1717_v7 = vld [vmem:[#allocation7] ss:$0 sm:$0xff] }
 0x4ab   : > { %1799 = vmatprep.mubr.msk.f32.mxu1 %vm2218_vm1, %v2217_v14  ;;  %1863 = vmatprep.subr.bf16.mxu1 %v2226_v12 }
 0x4b0   : > { %v1981_v8 = vpop.eup %1980 }
 0x4b1   : > { %1800 = vmatmul.mubr.msk.f32.vlgmr.msra.gmra.mrb[8].mxu1 %vm671_vm3, %v1981_v8  ;;  %v1171_v9 = vsel %vm671_vm3, %v1981_v8, 0.0 }
 0x4b2   : > { %1172 = vadd.xlane.f32.xlu0 %v1171_v9  ;;  %1829 = vmatprep.mubr.msk.f32.mxu1 %vm2218_vm1, %v2217_v14  ;;  %v1718_v9 = vld [vmem:[#allocation8] ss:$0 sm:$0xff] }
 0x4b3   : > { %1865 = vmatpush3.bf16.msra.mxu1 %v1864_v63 }
 0x4b4   : > { %1866 = vmatprep.subr.bf16.mxu1 %v2226_v12 }
 0x532   : > { %v842_v15 = vpop.xlane.xlu1 %841 }
 0x533   : > { %1982 = vrcp.f32 %v842_v15  ;;  %v1477_v15 = vld [vmem:[%s2787_s26 + $0x8] sm:$0xff] }
 0x534   : > { %v1870_v16 = vpack.c.bf16 %v1477_v15, %v1476_v13 }
 0x536   : > { %v680_v41 = vpop.xlane.xlu1 %679 }
 0x537   : > { %v1008_v19 = vpop.xlane.xlu0 %1007 }
 0x538   : > { %1984 = vrcp.f32 %v1008_v19  ;;  %v1719_v19 = vld [vmem:[#allocation10] ss:$0 sm:$0xff] }
 0x53d   : > { %v1983_v28 = vpop.eup %1982 }
 0x53f   : > { %v1173_v29 = vpop.xlane.xlu0 %1172 }
 0x540   : > { %1986 = vrcp.f32 %v1173_v29 }
 0x541   : > { %1988 = vrcp.f32 %v680_v41 }
 0x542   : > { %v1985_v33 = vpop.eup %1984 }
 0x54a   : > { %v1987_v37 = vpop.eup %1986 }
 0x54b   : > { %v1989_v42 = vpop.eup %1988 }
 0x573   : > { %v750_v23 = vpop.f32.mrb[2].mxu1 }
 0x574   : > { %v1771_v26 = vpop.f32.mrb[3].mxu1  ;;  %v755_v45 = vmul.f32 %v1989_v42, %v750_v23 }
 0x577   : > { %v916_v30 = vpop.f32.mrb[4].mxu1 }
 0x578   : > { %v921_v31 = vmul.f32 %v1983_v28, %v916_v30  ;;  %v1781_v32 = vpop.f32.mrb[5].mxu1 }
 0x57a   : > { %1253 = vrot.lane.b32.xlu0 %v921_v31, %s2224_s28  ;;  %s2789_s28 = sld [smem:[#allocation20_spill]] }
 0x57c   : > { %v1081_v34 = vpop.f32.mrb[6].mxu1 }
 0x57d   : > { %v1086_v35 = vmul.f32 %v1985_v33, %v1081_v34  ;;  %v1791_v36 = vpop.f32.mrb[7].mxu1 }
 0x57f   : > { %1257 = vrot.lane.b32.xlu1 %v1086_v35, %s2222_s10 }
 0x580   : > { %s2703_s5 = scalar_lea.hbm %s2789_s28, %s1724_s16 }
 0x584   : > { %v1246_v38 = vpop.f32.mrb[8].mxu1 }
 0x585   : > { %v1251_v39 = vmul.f32 %v1987_v37, %v1246_v38  ;;  %v1801_v40 = vpop.f32.mrb[9].mxu1 }
 0x587   : > { %1261 = vrot.lane.b32.xlu1 %v1251_v39, %s2221_s29 }
 0x5ec   : > { %v1254_v43 = vpop.permute.xlu0 %1253 }
 0x5ed   : > { %v1264_v46 = vsel %vm596_vm2, %v755_v45, %v1254_v43 }
 0x5f1   : > { %v1258_v44 = vpop.permute.xlu1 %1257 }
 0x5f2   : > { %v1265_v47 = vsel %vm482_vm0, %v1264_v46, %v1258_v44 }
 0x5f9   : > { %v1262_v48 = vpop.permute.xlu1 %1261 }
 0x5fa   : > { %v1267_v49 = vsel %vm1266_vm4, %v1265_v47, %v1262_v48 }
 0x5fb   : > { %1819 = vmatmul.mubr.msk.f32.vlgmr.msra.gmra.mrb[8].mxu0 %vm1283_vm5, %v1267_v49 }
 0x6ce   : > { %v1353_v51 = vpop.f32.mrb[8].mxu0 }
 0x6cf   : > { %v1354_v52 = vadd.f32 %v1715_v50, %v1353_v51  ;;  %v1820_v53 = vpop.f32.mrb[9].mxu0 }
 0x6d1   : > { %v1357_v54 = vadd.f32 %v1354_v52, %v2533_v0  ;;  %v1389_v0 = vld [vmem:[%s2756_s8 + $0x10] sm:$0xff] }
 0x6d2   : > { %v1867_v2 = vpack.c.bf16 %v1390_v1, %v1389_v0 }
 0x6d3   : > { %v1360_v55 = vsel %vm482_vm0, %v1357_v54, 0.0 }
 0x6d4   : > { %1361 = vadd.xlane.f32.xlu0 %v1360_v55  ;;  %1868 = vmatpush3.bf16.msra.mxu1 %v1867_v2 }
 0x6d5   : > { %1869 = vmatprep.subr.bf16.mxu1 %v2226_v12 }
 0x761   : > { %v1362_v56 = vpop.xlane.xlu0 %1361 }
 0x762   : > { %v1363_v57 = vmul.f32 0.03125, %v1362_v56 }
 0x764   : > { %v1364_v58 = vsub.f32 %v1357_v54, %v1363_v57 }
 0x766   : > { %v1365_v59 = vmul.f32 %v1364_v58, %v1364_v58 }
 0x768   : > { %v1366_v60 = vsel %vm482_vm0, %v1365_v59, 0.0 }
 0x769   : > { %1367 = vadd.xlane.f32.xlu1 %v1366_v60 }
 0x7f6   : > { %v1368_v3 = vpop.xlane.xlu1 %1367 }
 0x7f7   : > { %v1369_v4 = vmul.f32 0.03125, %v1368_v3 }
 0x7f9   : > { %v1370_v5 = vadd.f32 1e-05, %v1369_v4 }
 0x7fb   : > { %1990 = vrsqrt.f32 %v1370_v5 }
 0x805   : > { %v1991_v6 = vpop.eup %1990 }
 0x806   : > { %v1372_v8 = vmul.f32 %v1991_v6, %v1364_v58 }
 0x808   : > { %v1379_v10 = vmul.f32 %v1717_v7, %v1372_v8 }
 0x80a   : > { %v1386_v11 = vadd.f32 %v1718_v9, %v1379_v10 }
 0x80c   : > { %1830 = vmatmul.mubr.msk.f32.vlgmr.msra.gmra.mrb[10].mxu1 %vm482_vm0, %v1386_v11 }
 0x80d   : > { %1840 = vmatprep.mubr.msk.f32.mxu1 %vm2218_vm1, %v2217_v14  ;;  %1871 = vmatpush3.bf16.msra.mxu1 %v1870_v16  ;;  %v1479_v14 = vld [vmem:[%s2787_s26 + $0x18] sm:$0xff] }
 0x80e   : > { %1872 = vmatprep.subr.bf16.mxu1 %v2226_v12  ;;  %v1873_v18 = vpack.c.bf16 %v1479_v14, %v1478_v17 }
 0x811   : > { %1874 = vmatpush3.bf16.msra.mxu1 %v1873_v18 }
 0x8df   : > { %v1467_v20 = vpop.f32.mrb[10].mxu1 }
 0x8e0   : > { %v1468_v21 = vadd.f32 %v1719_v19, %v1467_v20  ;;  %v1831_v22 = vpop.f32.mrb[11].mxu1 }
 0x8e2   : > { %v1472_v23 = vmul.f32 0.70710677, %v1468_v21  ;;  %v1471_v12 = vmul.f32 0.5, %v1468_v21 }
 0x8e4   : > { %1992 = verf.f32 %v1472_v23 }
 0x8ee   : > { %v1993_v24 = vpop.eup %1992 }
 0x8ef   : > { %v1474_v25 = vadd.f32 1.0, %v1993_v24 }
 0x8f1   : > { %v1475_v26 = vmul.f32 %v1474_v25, %v1471_v12 }
 0x8f3   : > { %1841 = vmatmul.mubr.msk.f32.vlgmr.msra.gmra.mrb[12].mxu1 %vm482_vm0, %v1475_v26 }
 0x9c6   : > { %v1556_v28 = vpop.f32.mrb[12].mxu1 }
 0x9c7   : > { %v1557_v29 = vadd.f32 %v1721_v27, %v1556_v28  ;;  %v1842_v30 = vpop.f32.mrb[13].mxu1 }
 0x9c9   : > { %v1560_v31 = vadd.f32 %v1557_v29, %v1357_v54 }
 0x9cb   : > { %1561 = vst.msk [vmem:[%s478_s13] sm:$0xff] %vm482_vm0, %v1560_v31 }
 0x9cc   : > { %2149 = shalt.err (!%p2146_p0)
}
 0x9cd   : > { %s2150_s6 = scalar_lea.hbm %s2703_s5, 128  ;;  %s2154_s13 = scalar_lea.hbm %s2789_s28, 256 }
 0x9ce   : > { %p2151_p2 = scmp.ne.s32.totalorder %s2703_s5, %s2150_s6  ;;  %p2155_p11 = scmp.lt.u32.totalorder %s2703_s5, %s2789_s28 }
 0x9cf   : > { %p2156_p12 = scmp.lt.u32.totalorder %s2154_s13, %s2150_s6  ;;  %p2158_p6 = scmp.lt.u32.totalorder %s2150_s6, %s2703_s5 }
 0x9d0   : > { %p2152_p8 = pnand %p2151_p2, %p2790_p5 }
 0x9d1   : > { %p2157_p1 = por %p2156_p12, %p2155_p11 }
 0x9d2   : > { %p2153_p10 = pneg %p2152_p8 }
 0x9d3   : > { %p2159_p7 = por %p2158_p6, %p2157_p1 }
 0x9d5   : > { %p2160_p9 = pnand %p2159_p7, %p2153_p10 }
 0x9d7   : > { %2163 = shalt.err (!%p2160_p9)
}
 0x9d8   : > { %1893 = dma.vmem_to_hbm [thread:$0]  (%p2790_p5), %s2705_s30, 128, %s2703_s5, %s1563_s17  }
 0x9d9 PF: > { %s1588_s27 = sand.u32 1, %s2198_s21   ;;  %p2791_p4 = scmp.ne.s32.totalorder %s2780_s19, 0 }
 0x9da   : > { %p2792_p3 = scmp.ge.s32.totalorder %s2210_s24, 2  ;;  %s1589_s14 = scalar_lea.sflag [#allocation4], %s1588_s27 }
 0x9dc   : > { %p1913_p13 = pnand %p2792_p3, %p2791_p4 }
 0x9de   : > { %2193 = dma.done.wait (!%p1913_p13), %s1589_s14, 128  }
 0x9df   : > { %2195 = vsyncadd (!%p1913_p13), %s1589_s14, 4294967168  ;;  %p27_p0 = scmp.ge.s32.totalorder %s2439_s15, 4   ;;  %s2793_s21 = smov %s2202_s22 }
 0x9e0   : > { %s2794_s22 = smov %s2206_s23  ;;  %s2795_s23 = smov %s2450_s25 }
 0x9e1   : > { %s2796_s24 = smov %s2439_s15  ;;  %29 = sbr.rel (!%p27_p0) target bundleno = 13 (0xd), region = 129 }
 0x9e8   :  { %1594 = vsyncpa [#allocation3], 1 }
 0x9e9   :  { %1596 = vsyncpa [#allocation3 + $0x1], 1 }
 0x9ea   :  { %1597 = vsyncpa [#allocation6], 1 }
 0x9eb   :  { %1598 = vsyncpa [#allocation9], 1 }
 0x9ec   :  { %1599 = vsyncpa [#allocation4], 1 }
 0x9ed   :  { %1601 = vsyncpa [#allocation4 + $0x1], 1 }

</bundles_post_ra>
